<compile_context>
chip_gen: v5e
topology: v5e:2x2
jax: 0.10.0
libtpu: 0.0.40
codegen_flags: <defaults>
</compile_context>

<pallas_src>
import functools

import jax
import jax.numpy as jnp
from jax.experimental import pallas as pl
from jax.experimental.pallas import tpu as pltpu


def _round_up(v, m):
    return (v + m - 1) // m * m


def _cdiv(a, b):
    return (a + b - 1) // b


def _linear_relu_clamp_kernel(x_ref, w_ref, b_ref, o_ref, *, compute_dtype):
    # x_ref: (Cin, tT)  input dtype (cast to bf16 here -> no extra HBM pass)
    # w_ref: (tN, Cin)  compute_dtype, torch (out_features, in_features) layout
    # b_ref: (tN, 1)    f32
    # o_ref: (tN, tT)   output dtype
    x = x_ref[...].astype(compute_dtype)
    y = jnp.dot(w_ref[...], x, preferred_element_type=jnp.float32)
    y = y + b_ref[...]                           # bias broadcast over T (lanes)
    y = jnp.minimum(jnp.maximum(y, 0.0), 20.0)   # ReLU + clamp_max_(x, 20)
    o_ref[...] = y.astype(o_ref.dtype)


def linear_forward(x, weight, bias, dropout_rate=0.0,
                   compute_dtype=jnp.bfloat16):
    """Forward of the nb_asr Linear module.

    x:      (B, in_features, T)
    weight: (out_features, in_features)   -- torch nn.Linear layout
    bias:   (out_features,)
    returns (B, out_features, T)
    """
    B, Cin, T = x.shape
    Cout, Cin_w = weight.shape
    assert Cin_w == Cin, (Cin_w, Cin)

    # Lane-dense T tiles (multiple of 128), sublane-aligned Cout tiles.
    tT = min(512, _round_up(T, 128))
    tN = min(256, _round_up(Cout, 8))
    # Keep the (double-buffered) activation block comfortably inside VMEM
    # even for very large in_features.
    while tT > 128 and Cin * tT * x.dtype.itemsize * 2 > 16 * 1024 * 1024:
        tT //= 2

    n_tiles = _cdiv(Cout, tN)
    t_tiles = _cdiv(T, tT)

    # Small, one-time casts outside the kernel; the big activation tensor is
    # streamed in its native dtype and cast in-kernel.
    w_c = weight.astype(compute_dtype)
    b2d = bias.astype(jnp.float32).reshape(Cout, 1)

    # Choose grid ordering to minimize redundant HBM traffic:
    #   T innermost    -> weight tile resident, x re-read n_tiles times
    #   Cout innermost -> x tile resident, weight re-read t_tiles times
    x_bytes = B * Cin * T * x.dtype.itemsize
    w_bytes = B * Cout * Cin * jnp.dtype(compute_dtype).itemsize
    extra_t_inner = (n_tiles - 1) * x_bytes
    extra_n_inner = (t_tiles - 1) * w_bytes

    if extra_n_inner <= extra_t_inner:
        # Cout tiles innermost: activation block stays resident across j.
        grid = (B, t_tiles, n_tiles)
        x_map = lambda b, i, j: (b, 0, i)
        w_map = lambda b, i, j: (j, 0)
        o_map = lambda b, i, j: (b, j, i)
    else:
        # T tiles innermost: weight / bias blocks stay resident across i.
        grid = (B, n_tiles, t_tiles)
        x_map = lambda b, j, i: (b, 0, i)
        w_map = lambda b, j, i: (j, 0)
        o_map = lambda b, j, i: (b, j, i)

    kernel = functools.partial(_linear_relu_clamp_kernel,
                               compute_dtype=compute_dtype)

    out = pl.pallas_call(
        kernel,
        out_shape=jax.ShapeDtypeStruct((B, Cout, T), x.dtype),
        grid=grid,
        in_specs=[
            pl.BlockSpec((None, Cin, tT), x_map),   # activations (B squeezed)
            pl.BlockSpec((tN, Cin), w_map),         # weight
            pl.BlockSpec((tN, 1), w_map),           # bias
        ],
        out_specs=pl.BlockSpec((None, tN, tT), o_map),
        compiler_params=pltpu.CompilerParams(
            dimension_semantics=("parallel", "parallel", "parallel"),
            vmem_limit_bytes=64 * 1024 * 1024),
    )(x, w_c, b2d)

    # TODO(synk): training-mode dropout (pltpu.prng_seed + prng_random_bits +
    # mask/scale in-kernel) is not implemented; dropout is identity here
    # (eval mode / p=0, which matches the module's default dropout_rate=0).
    del dropout_rate

    return out


if __name__ == "__main__":
    def run_case(B, Cin, T, Cout, key):
        kx, kw, kb = jax.random.split(key, 3)
        x = jax.random.normal(kx, (B, Cin, T), dtype=jnp.float32)
        w = jax.random.normal(kw, (Cout, Cin), dtype=jnp.float32) * 0.1
        b = jax.random.normal(kb, (Cout,), dtype=jnp.float32) * 0.1

        out = jax.block_until_ready(linear_forward(x, w, b))

        # Reference: same bf16-rounded inputs, f32 accumulation, then
        # bias + ReLU + clamp_max(20), in the module's (B, Cout, T) layout.
        xb = x.astype(jnp.bfloat16).astype(jnp.float32)
        wb = w.astype(jnp.bfloat16).astype(jnp.float32)
        y = jnp.einsum("oc,bct->bot", wb, xb) + b[None, :, None]
        ref = jnp.minimum(jnp.maximum(y, 0.0), 20.0)

        assert out.shape == (B, Cout, T), out.shape
        err = float(jnp.max(jnp.abs(out - ref)))
        assert jnp.allclose(out, ref, atol=2e-2, rtol=2e-2), err

    key = jax.random.PRNGKey(0)
    k1, k2, k3 = jax.random.split(key, 3)
    # Small shape consistent with the module's forward: (B, in_features, T);
    # single edge-masked tile on both T and Cout.
    run_case(2, 32, 8, 64, k1)
    # Multi-tile T with a partial last tile; T-innermost (weight-resident) path.
    run_case(2, 96, 700, 200, k2)
    # Multi-tile on both axes; Cout-innermost (activation-resident) path.
    run_case(2, 64, 1408, 512, k3)

    print("KERNEL_OK")
</pallas_src>

<mosaic_0001>
module attributes {stable_mosaic.version = 11 : i64} {
  func.func @_linear_relu_clamp_kernel(%arg0: i32, %arg1: i32, %arg2: i32, %arg3: memref<1x32x128xf32, #tpu.memory_space<vmem>>, %arg4: memref<64x32xbf16, #tpu.memory_space<vmem>>, %arg5: memref<64x1xf32, #tpu.memory_space<vmem>>, %arg6: memref<1x64x128xf32, #tpu.memory_space<vmem>>) attributes {dimension_semantics = [#tpu.dimension_semantics<parallel>, #tpu.dimension_semantics<parallel>, #tpu.dimension_semantics<parallel>], iteration_bounds = array<i64: 2, 1, 1>, scalar_prefetch = 0 : i64, scratch_operands = 0 : i64, tpu.core_type = #tpu.core_type<tc>, window_params = [{transform_indices = @transform_0, window_bounds = array<i64: 1, 32, 128>}, {transform_indices = @transform_1, window_bounds = array<i64: 64, 32>}, {transform_indices = @transform_2, window_bounds = array<i64: 64, 1>}, {transform_indices = @transform_3, window_bounds = array<i64: 1, 64, 128>}]} {
    %c0 = arith.constant 0 : index
    %c0_0 = arith.constant 0 : index
    %c0_1 = arith.constant 0 : index
    %0 = vector.load %arg3[%c0, %c0_0, %c0_1] : memref<1x32x128xf32, #tpu.memory_space<vmem>>, vector<1x32x128xf32>
    %1 = vector.shape_cast %0 : vector<1x32x128xf32> to vector<32x128xf32>
    %2 = arith.truncf %1 : vector<32x128xf32> to vector<32x128xbf16>
    %c0_2 = arith.constant 0 : index
    %c0_3 = arith.constant 0 : index
    %3 = vector.load %arg4[%c0_2, %c0_3] : memref<64x32xbf16, #tpu.memory_space<vmem>>, vector<64x32xbf16>
    %cst = arith.constant dense<0.000000e+00> : vector<64x128xf32>
    %4 = tpu.matmul %3, %2, %cst {dimension_numbers = #tpu.dot_dimension_numbers<[1], [0], [0], [1], [0, 0, 1, 1], [], []>} : vector<64x32xbf16>, vector<32x128xbf16>, vector<64x128xf32> -> vector<64x128xf32>
    %c0_4 = arith.constant 0 : index
    %c0_5 = arith.constant 0 : index
    %5 = vector.load %arg5[%c0_4, %c0_5] : memref<64x1xf32, #tpu.memory_space<vmem>>, vector<64x1xf32>
    %6 = vector.broadcast %5 : vector<64x1xf32> to vector<64x128xf32>
    %7 = arith.addf %4, %6 : vector<64x128xf32>
    %cst_6 = arith.constant 0.000000e+00 : f32
    %8 = vector.broadcast %cst_6 : f32 to vector<64x128xf32>
    %9 = arith.maximumf %7, %8 : vector<64x128xf32>
    %cst_7 = arith.constant 2.000000e+01 : f32
    %10 = vector.broadcast %cst_7 : f32 to vector<64x128xf32>
    %11 = arith.minimumf %9, %10 : vector<64x128xf32>
    %c0_8 = arith.constant 0 : index
    %c0_9 = arith.constant 0 : index
    %c0_10 = arith.constant 0 : index
    %12 = vector.load %arg6[%c0_8, %c0_9, %c0_10] : memref<1x64x128xf32, #tpu.memory_space<vmem>>, vector<1x64x128xf32>
    %13 = vector.shape_cast %12 : vector<1x64x128xf32> to vector<64x128xf32>
    %14 = vector.shape_cast %11 : vector<64x128xf32> to vector<1x64x128xf32>
    tpu.vector_store %arg6[%c0_8, %c0_9, %c0_10], %14 {strides = array<i32>} : memref<1x64x128xf32, #tpu.memory_space<vmem>>, vector<1x64x128xf32>,
    return
  }
  func.func @transform_0(%arg0: i32, %arg1: i32, %arg2: i32) -> (i32, i32, i32) {
    %c0_i32 = arith.constant 0 : i32
    %c0_i32_0 = arith.constant 0 : i32
    return %arg0, %c0_i32, %arg1 : i32, i32, i32
  }
  func.func @transform_1(%arg0: i32, %arg1: i32, %arg2: i32) -> (i32, i32) {
    %c0_i32 = arith.constant 0 : i32
    %c0_i32_0 = arith.constant 0 : i32
    return %arg2, %c0_i32 : i32, i32
  }
  func.func @transform_2(%arg0: i32, %arg1: i32, %arg2: i32) -> (i32, i32) {
    %c0_i32 = arith.constant 0 : i32
    %c0_i32_0 = arith.constant 0 : i32
    return %arg2, %c0_i32 : i32, i32
  }
  func.func @transform_3(%arg0: i32, %arg1: i32, %arg2: i32) -> (i32, i32, i32) {
    %c0_i32 = arith.constant 0 : i32
    return %arg0, %arg2, %arg1 : i32, i32, i32
  }
}

</mosaic_0001>

<bundles_post_ra>
// kernel: tpu_custom_call.1
= control target key start
LH: loop header
LB: loop body
LE: loop exit
PB: predicated region body
PF: predicated region fallthrough
CT: control target
= control target key end

     0   :  { %s661_s12 = smov 0   ;;  %s663_s13 = smov 0   ;;  %s744_s0 = inlined_call_operand.vmem [shape: f32[2,32,8], index: 0, kind: input, shape index: {}]   ;;  %s745_s1 = inlined_call_operand.vmem [shape: bf16[64,32], index: 1, kind: input, shape index: {}]   ;;  %s746_s2 = inlined_call_operand.vmem [shape: f32[64,1], index: 2, kind: input, shape index: {}]   ;;  %s747_s3 = inlined_call_operand.vmem [shape: f32[2,64,8], index: 3, kind: output, shape index: {}]  }
   0x1   :  { %s665_s14 = smov 0  }
   0x2 LB: > { %s32_s15 = sadd.s32 1, %s634_s13  ;;  %p549_p0 = scmp.ge.s32.totalorder %s638_s14, 1  ;;  %s638_s14 = sphi %s665_s14, %s13_s14   ;;  %s634_s13 = sphi %s663_s13, %s749_s13   ;;  %s630_s12 = sphi %s661_s12, %s748_s12  }
   0x3   : > { %p34_p1 = scmp.ge.s32.totalorder %s32_s15, 2  ;;  %p187_p2 = scmp.lt.s32.totalorder %s638_s14, 3 }
   0x5   : > { %s751_s15 = smov (%p34_p1, %s32_s15), 0  ;;  %p188_p3 = pnand %p549_p0, %p187_p2 }
   0x6   : > { %p231_p4 = scmp.lt.s32.totalorder (!%p188_p3), %s630_s12, 1 }
   0x7   : > { %191 = sbr.rel (%p188_p3) target bundleno = 175 (0xaf), region = 32 }
   0xc   : > { %v281_v0 = vld [vmem:[%s746_s2 + $0x10] sm:$0xff]  ;;  %v279_v1 = vld [vmem:[%s746_s2] sm:$0xff]  ;;  %v640_v2 = vmov 0   ;;  %s753_s12 = smov (!%p231_p4, %s630_s12), 1  ;;  %v282_v9 = vld [vmem:[%s746_s2 + $0x18] sm:$0xff]  ;;  %vm347_vm0 = vcmask 261120  }
   0xd   : > { %614 = vset.pattern.permute.xlu1 %v640_v2  ;;  %613 = vset.pattern.permute.xlu0 %v640_v2  ;;  %v283_v3 = vld [vmem:[%s746_s2 + $0x20] sm:$0xff]  ;;  %s576_s22 = sshll.u32 %s753_s12, 5  ;;  %v280_v10 = vld [vmem:[%s746_s2 + $0x8] sm:$0xff]  ;;  %v580_v15 = vld [vmem:[%s745_s1 + $0x10] sm:$0xff]  ;;  %s577_s21 = sshll.u32 %s753_s12, 6 }
   0xe   : > { %299 = vperm.xlu1 %614, %v281_v0   ;;  %289 = vperm.xlu0 %613, %v279_v1   ;;  %s238_s25 = scalar_lea.vmem %s744_s0, %s576_s22  ;;  %v284_v12 = vld [vmem:[%s746_s2 + $0x28] sm:$0xff]  ;;  %v578_v13 = vld [vmem:[%s745_s1] sm:$0xff]  ;;  %v581_v16 = vld [vmem:[%s745_s1 + $0x18] sm:$0xff]  ;;  %s725_s24 = scalar_lea.vmem %s747_s3, %s577_s21 }
   0xf   : > { %615 = vset.pattern.permute.xlu2 %v640_v2  ;;  %v267_v4 = vld [vmem:[%s238_s25 + $0x10] sm:$0xff]  ;;  %v268_v5 = vld [vmem:[%s238_s25 + $0x18] sm:$0xff]  ;;  %v265_v6 = vld [vmem:[%s238_s25] sm:$0xff] }
  0x10   : > { %309 = vperm.xlu2 %615, %v283_v3   ;;  %v270_v7 = vpack.c.bf16 %v268_v5, %v267_v4  ;;  %v266_v8 = vld [vmem:[%s238_s25 + $0x8] sm:$0xff]  ;;  %v286_v17 = vld [vmem:[%s746_s2 + $0x38] sm:$0xff]  ;;  %v285_v18 = vld [vmem:[%s746_s2 + $0x30] sm:$0xff] }
  0x11   : > { %v269_v11 = vpack.c.bf16 %v266_v8, %v265_v6  ;;  %v579_v14 = vld [vmem:[%s745_s1 + $0x8] sm:$0xff] }
  0x12   : > { %366 = vmatpush.bf16.msra.mxu0 %v270_v7  ;;  %582 = vmatpush.bf16.msra.mxu1 %v270_v7 }
  0x13   : > { %583 = vmatpush.bf16.msra.mxu2 %v270_v7  ;;  %584 = vmatpush.bf16.msra.mxu3 %v270_v7 }
  0x16   : > { %304 = vperm.xlu1 %614, %v282_v9   ;;  %294 = vperm.xlu0 %613, %v280_v10  }
  0x17   : > { %367 = vmatpush.bf16.msra.mxu0 %v269_v11  ;;  %585 = vmatpush.bf16.msra.mxu1 %v269_v11 }
  0x18   : > { %314 = vperm.xlu2 %615, %v284_v12   ;;  %586 = vmatpush.bf16.msra.mxu2 %v269_v11 }
  0x19   : > { %587 = vmatpush.bf16.msra.mxu3 %v269_v11 }
  0x1a   : > { %570 = vmatmul.msk.bf16.vlgmr.msra.gmra.mxu0 %vm347_vm0, %v578_v13  ;;  %571 = vmatmul.msk.bf16.vlgmr.msra.gmra.mxu1 %vm347_vm0, %v579_v14 }
  0x1b   : > { %572 = vmatmul.msk.bf16.vlgmr.msra.gmra.mxu2 %vm347_vm0, %v580_v15 }
  0x1c   : > { %573 = vmatmul.msk.bf16.vlgmr.msra.gmra.mxu3 %vm347_vm0, %v581_v16 }
  0x1e   : > { %324 = vperm.xlu1 %614, %v286_v17   ;;  %319 = vperm.xlu0 %613, %v285_v18  }
  0x6a   : > { %v310_v29 = vpop.permute.xlu2 %309 }
  0x72   : > { %v315_v50 = vpop.permute.xlu2 %314 }
  0x80   : > { %v290_v19 = vpop.permute.xlu0 %289  ;;  %v300_v20 = vpop.permute.xlu1 %299 }
  0x88   : > { %v295_v21 = vpop.permute.xlu0 %294  ;;  %v305_v28 = vpop.permute.xlu1 %304 }
  0x90   : > { %v320_v32 = vpop.permute.xlu0 %319  ;;  %v325_v49 = vpop.permute.xlu1 %324 }
  0x97   : > { %v369_v22 = vpop.f32.mrf.mxu0  ;;  %v374_v23 = vpop.f32.mrf.mxu1 }
  0x98   : > { %v370_v24 = vadd.f32 %v369_v22, %v290_v19  ;;  %v375_v25 = vadd.f32 %v374_v23, %v300_v20 }
  0x9a   : > { %v389_v26 = vmax.f32 %v370_v24, 0.0  ;;  %v391_v27 = vmax.f32 %v375_v25, 0.0 }
  0x9c   : > { %v397_v30 = vmin.f32 %v389_v26, 20.0  ;;  %v399_v31 = vmin.f32 %v391_v27, 20.0 }
  0x9e   : > { %405 = vst [vmem:[%s725_s24] sm:$0xff] %v397_v30  ;;  %v379_v33 = vpop.f32.mrf.mxu2 }
  0x9f   : > { %v384_v34 = vpop.f32.mrf.mxu3  ;;  %407 = vst [vmem:[%s725_s24 + $0x10] sm:$0xff] %v399_v31  ;;  %v380_v35 = vadd.f32 %v379_v33, %v310_v29  ;;  %v371_v37 = vpop.f32.mrf.mxu0 }
  0xa0   : > { %v385_v36 = vadd.f32 %v384_v34, %v320_v32  ;;  %v376_v38 = vpop.f32.mrf.mxu1  ;;  %v372_v39 = vadd.f32 %v371_v37, %v295_v21 }
  0xa1   : > { %v377_v40 = vadd.f32 %v376_v38, %v305_v28  ;;  %v393_v41 = vmax.f32 %v380_v35, 0.0 }
  0xa2   : > { %v395_v42 = vmax.f32 %v385_v36, 0.0  ;;  %v390_v43 = vmax.f32 %v372_v39, 0.0 }
  0xa3   : > { %v392_v44 = vmax.f32 %v377_v40, 0.0  ;;  %v401_v45 = vmin.f32 %v393_v41, 20.0 }
  0xa4   : > { %v403_v46 = vmin.f32 %v395_v42, 20.0  ;;  %v398_v47 = vmin.f32 %v390_v43, 20.0 }
  0xa5   : > { %v400_v48 = vmin.f32 %v392_v44, 20.0  ;;  %409 = vst [vmem:[%s725_s24 + $0x20] sm:$0xff] %v401_v45 }
  0xa6   : > { %411 = vst [vmem:[%s725_s24 + $0x30] sm:$0xff] %v403_v46  ;;  %v381_v51 = vpop.f32.mrf.mxu2 }
  0xa7   : > { %v386_v52 = vpop.f32.mrf.mxu3  ;;  %406 = vst [vmem:[%s725_s24 + $0x8] sm:$0xff] %v398_v47  ;;  %v382_v53 = vadd.f32 %v381_v51, %v315_v50 }
  0xa8   : > { %v387_v54 = vadd.f32 %v386_v52, %v325_v49  ;;  %408 = vst [vmem:[%s725_s24 + $0x18] sm:$0xff] %v400_v48 }
  0xa9   : > { %v394_v55 = vmax.f32 %v382_v53, 0.0 }
  0xaa   : > { %v396_v56 = vmax.f32 %v387_v54, 0.0 }
  0xab   : > { %v402_v57 = vmin.f32 %v394_v55, 20.0 }
  0xac   : > { %v404_v58 = vmin.f32 %v396_v56, 20.0 }
  0xad   : > { %410 = vst [vmem:[%s725_s24 + $0x28] sm:$0xff] %v402_v57 }
  0xae   : > { %412 = vst [vmem:[%s725_s24 + $0x38] sm:$0xff] %v404_v58 }
  0xaf PF: > { %s13_s14 = sadd.s32 1, %s638_s14   ;;  %s748_s12 = smov %s634_s13 }
  0xb0   : > { %p10_p5 = scmp.ge.s32.totalorder %s13_s14, 4   ;;  %s749_s13 = smov %s751_s15 }
  0xb2   :  { %12 = sbr.rel (!%p10_p5) target bundleno = 2 (0x2), region = 68 }

</bundles_post_ra>
